<compile_context>
chip_gen: v7x
topology: tpu7x:2x2x1
jax: 0.10.0
libtpu: 0.0.40
codegen_flags: <defaults>
</compile_context>

<pallas_src>
import functools

import jax
import jax.numpy as jnp
from jax import lax
from jax.experimental import pallas as pl
from jax.experimental.pallas import tpu as pltpu


def _round_up(x, m):
    return (x + m - 1) // m * m


# ----------------------------------------------------------------------------
# Fused decoder-step kernel: grid = (n_layers,), one LSTM layer per grid step
# ----------------------------------------------------------------------------
def _decoder_step_kernel(ids_ref, emb_ref, wx_ref, wh_ref, b_ref,
                         wout_ref, bout_ref, h_in_ref, c_in_ref,
                         pred_ref, h_out_ref, c_out_ref,
                         x_buf, *, hid_dim):
    """Block shapes seen by the kernel:

    ids_ref   (Bp, 1)    int32   (resident)     emb_ref  (Vp, D)  wdt (resident)
    wx_ref    (1, D, Gp) wdt     (per layer)    wh_ref   (1, D, Gp) wdt
    b_ref     (1, 1, Gp) f32     (per layer)
    wout_ref  (D, Vp)    wdt     (resident)     bout_ref (1, Vp) f32 (resident)
    h_in/c_in (1, Bp, D) f32     (per layer)
    pred (Bp, Vp) f32 / h_out, c_out (1, Bp, D) f32
    x_buf (Bp, D) f32 scratch: layer input, persists across grid iterations.
    """
    layer = pl.program_id(0)
    H = hid_dim
    Bp, D = x_buf.shape
    wdt = emb_ref.dtype

    # ---- layer 0: embedding lookup as a one-hot MXU matmul -----------------
    @pl.when(layer == 0)
    def _embed():
        ids = ids_ref[...]                                          # (Bp, 1)
        cols = lax.broadcasted_iota(jnp.int32, (Bp, emb_ref.shape[0]), 1)
        onehot = (cols == ids).astype(wdt)                          # (Bp, Vp)
        x_buf[...] = jnp.dot(onehot, emb_ref[...],
                             preferred_element_type=jnp.float32)    # (Bp, D)
        # TODO(synk): nn.Dropout(p) is identity in eval mode; stochastic
        # dropout (with 1/(1-p) scaling) is intentionally not reproduced.

    # ---- LSTM cell for this layer; gates packed [i|f|g|o] at stride H ------
    x = x_buf[...]                                                  # (Bp, D)
    h = h_in_ref[0]                                                 # (Bp, D)
    c_prev = c_in_ref[0, :, :H]                                     # (Bp, H)

    gates = jnp.dot(x.astype(wdt), wx_ref[0],
                    preferred_element_type=jnp.float32)
    gates = gates + jnp.dot(h.astype(wdt), wh_ref[0],
                            preferred_element_type=jnp.float32)
    gates = gates + b_ref[0]                                        # (Bp, Gp)

    i_g = jax.nn.sigmoid(gates[:, 0 * H:1 * H])
    f_g = jax.nn.sigmoid(gates[:, 1 * H:2 * H])
    g_g = jnp.tanh(gates[:, 2 * H:3 * H])
    o_g = jax.nn.sigmoid(gates[:, 3 * H:4 * H])

    c_new = f_g * c_prev + i_g * g_g
    h_new = o_g * jnp.tanh(c_new)

    # Keep padded lanes of the carried state exactly zero (and finite), so
    # they never poison the next step's h @ W_h matmul.
    if H < D:
        zpad = jnp.zeros((Bp, D - H), jnp.float32)
        h_full = jnp.concatenate([h_new, zpad], axis=-1)
        c_full = jnp.concatenate([c_new, zpad], axis=-1)
    else:
        h_full, c_full = h_new, c_new

    h_out_ref[0] = h_full
    c_out_ref[0] = c_full
    x_buf[...] = h_full                    # becomes the next layer's input

    # ---- last layer: output projection --------------------------------------
    @pl.when(layer == pl.num_programs(0) - 1)
    def _project():
        pred_ref[...] = (jnp.dot(h_full.astype(wdt), wout_ref[...],
                                 preferred_element_type=jnp.float32)
                         + bout_ref[...])


# ----------------------------------------------------------------------------
# Parameter init (raw, PyTorch-shaped) + packing into padded kernel layout
# ----------------------------------------------------------------------------
def init_decoder_raw_params(key, output_dim, emb_dim, hid_dim, n_layers):
    """Raw parameters mirroring the nn.Module shapes (used by the reference)."""
    keys = jax.random.split(key, 3 + 4 * n_layers)
    k = 1.0 / jnp.sqrt(hid_dim)

    raw = {"embedding": jax.random.normal(keys[0], (output_dim, emb_dim),
                                          jnp.float32)}
    w_ih, w_hh, b_ih, b_hh = [], [], [], []
    for l in range(n_layers):
        in_dim = emb_dim if l == 0 else hid_dim
        kk = keys[1 + 4 * l: 1 + 4 * (l + 1)]
        w_ih.append(jax.random.uniform(kk[0], (4 * hid_dim, in_dim),
                                       jnp.float32, -k, k))
        w_hh.append(jax.random.uniform(kk[1], (4 * hid_dim, hid_dim),
                                       jnp.float32, -k, k))
        b_ih.append(jax.random.uniform(kk[2], (4 * hid_dim,), jnp.float32,
                                       -k, k))
        b_hh.append(jax.random.uniform(kk[3], (4 * hid_dim,), jnp.float32,
                                       -k, k))
    raw.update(w_ih=w_ih, w_hh=w_hh, b_ih=b_ih, b_hh=b_hh)
    raw["w_out"] = jax.random.uniform(keys[1 + 4 * n_layers],
                                      (output_dim, hid_dim), jnp.float32,
                                      -k, k)
    raw["b_out"] = jax.random.uniform(keys[2 + 4 * n_layers],
                                      (output_dim,), jnp.float32, -k, k)
    return raw


def pack_decoder_params(raw, output_dim, emb_dim, hid_dim, n_layers,
                        weight_dtype=jnp.bfloat16):
    """Pack weights into padded, pre-transposed, layer-stacked kernel layout.

    D  = round_up(max(emb_dim, hid_dim), 128)   shared input-feature width
    Gp = round_up(4*hid_dim, 128)               gates packed [i|f|g|o], stride H
    Vp = round_up(output_dim, 128)              vocab lane width
    Zero padding keeps unused rows/lanes inert.
    """
    D = _round_up(max(emb_dim, hid_dim), 128)
    Gp = _round_up(4 * hid_dim, 128)
    Vp = _round_up(output_dim, 128)

    emb = jnp.zeros((Vp, D), jnp.float32)
    emb = emb.at[:output_dim, :emb_dim].set(raw["embedding"])

    w_x = jnp.zeros((n_layers, D, Gp), jnp.float32)
    w_h = jnp.zeros((n_layers, D, Gp), jnp.float32)
    b = jnp.zeros((n_layers, 1, Gp), jnp.float32)
    for l in range(n_layers):
        in_dim = emb_dim if l == 0 else hid_dim
        w_x = w_x.at[l, :in_dim, :4 * hid_dim].set(raw["w_ih"][l].T)
        w_h = w_h.at[l, :hid_dim, :4 * hid_dim].set(raw["w_hh"][l].T)
        b = b.at[l, 0, :4 * hid_dim].set(raw["b_ih"][l] + raw["b_hh"][l])

    wout = jnp.zeros((D, Vp), jnp.float32)
    wout = wout.at[:hid_dim, :output_dim].set(raw["w_out"].T)
    bout = jnp.zeros((1, Vp), jnp.float32)
    bout = bout.at[0, :output_dim].set(raw["b_out"])

    return {
        "emb": emb.astype(weight_dtype),
        "w_x": w_x.astype(weight_dtype),
        "w_h": w_h.astype(weight_dtype),
        "b": b,                        # biases stay f32
        "wout": wout.astype(weight_dtype),
        "bout": bout,                  # f32
    }


def pad_state(hidden, cell, batch_pad, feat_pad):
    """Pad (L, B, H) state once to the (L, Bp, D) kernel layout."""
    L, B, H = hidden.shape
    hp = jnp.zeros((L, batch_pad, feat_pad), jnp.float32).at[:, :B, :H].set(hidden)
    cp = jnp.zeros((L, batch_pad, feat_pad), jnp.float32).at[:, :B, :H].set(cell)
    return hp, cp


# ----------------------------------------------------------------------------
# One decode step on pre-padded state (single fused pallas_call)
# ----------------------------------------------------------------------------
def decoder_step(packed, token_ids, hp, cp, *, batch, hid_dim):
    """token_ids: (B,) int32; hp/cp: (L, Bp, D) padded state (kept padded
    across steps).  Returns (pred_padded (Bp, Vp), hp_new, cp_new)."""
    L, Bp, D = hp.shape
    Gp = packed["w_x"].shape[-1]
    Vemb = packed["emb"].shape[0]
    Vp = packed["wout"].shape[-1]
    wbytes = jnp.dtype(packed["emb"].dtype).itemsize

    ids_p = jnp.zeros((Bp, 1), jnp.int32).at[:batch, 0].set(
        token_ids.astype(jnp.int32))

    # Cost estimate (per decode step).
    flops = (2 * Bp * Vemb * D                   # one-hot embedding matmul
             + L * 2 * (2 * Bp * D * Gp)         # two gate matmuls per layer
             + 2 * Bp * D * Vp)                  # output projection
    bytes_accessed = (int(sum(a.size * a.dtype.itemsize
                              for a in (packed["emb"], packed["w_x"],
                                        packed["w_h"], packed["b"],
                                        packed["wout"], packed["bout"])))
                      + 4 * hp.size * 4 + Bp * Vp * 4 + Bp * 4)
    cost = pl.CostEstimate(flops=int(flops),
                           transcendentals=int(5 * L * Bp * hid_dim),
                           bytes_accessed=int(bytes_accessed))

    # VMEM budget: resident blocks + double-buffered per-layer blocks.
    resident = (Vemb * D + D * Vp) * wbytes + (Bp * Vp + Bp * D) * 4 \
        + Vp * 4 + Bp * 4
    per_layer = 2 * (2 * D * Gp * wbytes + Gp * 4 + 4 * Bp * D * 4)
    vmem_limit = min(max(int(1.5 * (resident + per_layer)) + (1 << 20),
                         4 << 20), 64 << 20)

    kernel = functools.partial(_decoder_step_kernel, hid_dim=hid_dim)

    lmap = lambda l: (l, 0, 0)     # per-layer blocks
    rmap = lambda l: (0, 0)        # resident blocks (constant index map)

    pred_p, h_new, c_new = pl.pallas_call(
        kernel,
        grid_spec=pltpu.PrefetchScalarGridSpec(
            num_scalar_prefetch=0,
            grid=(L,),
            in_specs=[
                pl.BlockSpec((Bp, 1), rmap),         # ids
                pl.BlockSpec((Vemb, D), rmap),       # embedding table
                pl.BlockSpec((1, D, Gp), lmap),      # W_x (per layer)
                pl.BlockSpec((1, D, Gp), lmap),      # W_h (per layer)
                pl.BlockSpec((1, 1, Gp), lmap),      # bias (per layer)
                pl.BlockSpec((D, Vp), rmap),         # W_out
                pl.BlockSpec((1, Vp), rmap),         # b_out
                pl.BlockSpec((1, Bp, D), lmap),      # h_in (per layer)
                pl.BlockSpec((1, Bp, D), lmap),      # c_in (per layer)
            ],
            out_specs=(
                pl.BlockSpec((Bp, Vp), rmap),        # prediction
                pl.BlockSpec((1, Bp, D), lmap),      # h_out (per layer)
                pl.BlockSpec((1, Bp, D), lmap),      # c_out (per layer)
            ),
            scratch_shapes=[pltpu.VMEM((Bp, D), jnp.float32)],
        ),
        out_shape=(jax.ShapeDtypeStruct((Bp, Vp), jnp.float32),
                   jax.ShapeDtypeStruct((L, Bp, D), jnp.float32),
                   jax.ShapeDtypeStruct((L, Bp, D), jnp.float32)),
        # new hidden/cell written in place over the incoming state buffers
        input_output_aliases={7: 1, 8: 2},
        compiler_params=pltpu.CompilerParams(
            dimension_semantics=("arbitrary",),
            vmem_limit_bytes=vmem_limit),
        cost_estimate=cost,
    )(ids_p, packed["emb"], packed["w_x"], packed["w_h"], packed["b"],
      packed["wout"], packed["bout"], hp, cp)

    return pred_p, h_new, c_new


def decoder_forward(packed, token_ids, hidden, cell, *, output_dim, hid_dim):
    """PyTorch-signature convenience wrapper: unpadded in / unpadded out."""
    L, B, H = hidden.shape
    D = packed["w_x"].shape[1]
    Bp = max(_round_up(B, 8), 16)
    hp, cp = pad_state(hidden, cell, Bp, D)
    pred_p, hp, cp = decoder_step(packed, token_ids, hp, cp,
                                  batch=B, hid_dim=hid_dim)
    return pred_p[:B, :output_dim], hp[:, :B, :H], cp[:, :B, :H]


# ----------------------------------------------------------------------------
# Pure-JAX reference (PyTorch semantics, f32)
# ----------------------------------------------------------------------------
def decoder_forward_ref(raw, token_ids, hidden, cell):
    x = jnp.take(raw["embedding"], token_ids, axis=0)
    n_layers, _, H = hidden.shape
    new_h, new_c = [], []
    for l in range(n_layers):
        gates = (x @ raw["w_ih"][l].T + hidden[l] @ raw["w_hh"][l].T
                 + raw["b_ih"][l] + raw["b_hh"][l])
        i_g = jax.nn.sigmoid(gates[:, 0 * H:1 * H])
        f_g = jax.nn.sigmoid(gates[:, 1 * H:2 * H])
        g_g = jnp.tanh(gates[:, 2 * H:3 * H])
        o_g = jax.nn.sigmoid(gates[:, 3 * H:4 * H])
        c_new = f_g * cell[l] + i_g * g_g
        h_new = o_g * jnp.tanh(c_new)
        new_h.append(h_new)
        new_c.append(c_new)
        x = h_new
    pred = x @ raw["w_out"].T + raw["b_out"]
    return pred, jnp.stack(new_h), jnp.stack(new_c)


if __name__ == "__main__":
    OUTPUT_DIM = 32   # vocab size
    EMB_DIM = 16
    HID_DIM = 32
    N_LAYERS = 2
    BATCH = 4
    N_STEPS = 3

    root = jax.random.PRNGKey(0)
    k_params, k_tok, k_h, k_c = jax.random.split(root, 4)

    raw = init_decoder_raw_params(k_params, OUTPUT_DIM, EMB_DIM, HID_DIM,
                                  N_LAYERS)
    packed = pack_decoder_params(raw, OUTPUT_DIM, EMB_DIM, HID_DIM, N_LAYERS,
                                 weight_dtype=jnp.bfloat16)

    tokens = jax.random.randint(k_tok, (N_STEPS, BATCH), 0, OUTPUT_DIM,
                                jnp.int32)
    hidden = jax.random.normal(k_h, (N_LAYERS, BATCH, HID_DIM), jnp.float32)
    cell = jax.random.normal(k_c, (N_LAYERS, BATCH, HID_DIM), jnp.float32)

    # Tolerances account for bf16 weight storage vs. the f32 reference.
    tol = dict(rtol=1e-1, atol=5e-2)

    # --- PyTorch-signature single-step check ---------------------------------
    pred0, h0, c0 = decoder_forward(packed, tokens[0], hidden, cell,
                                    output_dim=OUTPUT_DIM, hid_dim=HID_DIM)
    jax.block_until_ready((pred0, h0, c0))
    pred0_r, h0_r, c0_r = decoder_forward_ref(raw, tokens[0], hidden, cell)
    assert pred0.shape == (BATCH, OUTPUT_DIM)
    assert h0.shape == (N_LAYERS, BATCH, HID_DIM)
    assert c0.shape == (N_LAYERS, BATCH, HID_DIM)
    assert jnp.allclose(pred0, pred0_r, **tol)
    assert jnp.allclose(h0, h0_r, **tol)
    assert jnp.allclose(c0, c0_r, **tol)

    # --- multi-step decode keeping the state padded / in-place across steps --
    D = packed["w_x"].shape[1]
    Bp = max(_round_up(BATCH, 8), 16)
    hp, cp = pad_state(hidden, cell, Bp, D)

    step = jax.jit(functools.partial(decoder_step, batch=BATCH,
                                     hid_dim=HID_DIM))

    h_ref, c_ref = hidden, cell
    for t in range(N_STEPS):
        pred_p, hp, cp = step(packed, tokens[t], hp, cp)
        jax.block_until_ready((pred_p, hp, cp))
        pred = pred_p[:BATCH, :OUTPUT_DIM]

        pred_r, h_ref, c_ref = decoder_forward_ref(raw, tokens[t], h_ref,
                                                   c_ref)
        assert jnp.allclose(pred, pred_r, **tol), f"pred mismatch at step {t}"
        assert jnp.allclose(hp[:, :BATCH, :HID_DIM], h_ref, **tol)
        assert jnp.allclose(cp[:, :BATCH, :HID_DIM], c_ref, **tol)

    print("KERNEL_OK")
</pallas_src>

<mosaic_0001>
module attributes {stable_mosaic.version = 11 : i64} {
  func.func @_decoder_step_kernel(%arg0: i32, %arg1: memref<16x1xi32, #tpu.memory_space<vmem>>, %arg2: memref<128x128xbf16, #tpu.memory_space<vmem>>, %arg3: memref<1x128x128xbf16, #tpu.memory_space<vmem>>, %arg4: memref<1x128x128xbf16, #tpu.memory_space<vmem>>, %arg5: memref<1x1x128xf32, #tpu.memory_space<vmem>>, %arg6: memref<128x128xbf16, #tpu.memory_space<vmem>>, %arg7: memref<1x128xf32, #tpu.memory_space<vmem>>, %arg8: memref<1x16x128xf32, #tpu.memory_space<vmem>>, %arg9: memref<1x16x128xf32, #tpu.memory_space<vmem>>, %arg10: memref<16x128xf32, #tpu.memory_space<vmem>>, %arg11: memref<1x16x128xf32, #tpu.memory_space<vmem>>, %arg12: memref<1x16x128xf32, #tpu.memory_space<vmem>>, %arg13: memref<16x128xf32, #tpu.memory_space<vmem>>) attributes {dimension_semantics = [#tpu.dimension_semantics<arbitrary>], iteration_bounds = array<i64: 2>, scalar_prefetch = 0 : i64, scratch_operands = 1 : i64, tpu.core_type = #tpu.core_type<tc>, window_params = [{pipeline_mode = #tpu.pipeline_mode<synchronous>, transform_indices = @transform_0, window_bounds = array<i64: 16, 1>}, {pipeline_mode = #tpu.pipeline_mode<synchronous>, transform_indices = @transform_1, window_bounds = array<i64: 128, 128>}, {transform_indices = @transform_2, window_bounds = array<i64: 1, 128, 128>}, {transform_indices = @transform_3, window_bounds = array<i64: 1, 128, 128>}, {transform_indices = @transform_4, window_bounds = array<i64: 1, 1, 128>}, {pipeline_mode = #tpu.pipeline_mode<synchronous>, transform_indices = @transform_5, window_bounds = array<i64: 128, 128>}, {pipeline_mode = #tpu.pipeline_mode<synchronous>, transform_indices = @transform_6, window_bounds = array<i64: 1, 128>}, {transform_indices = @transform_7, window_bounds = array<i64: 1, 16, 128>}, {transform_indices = @transform_8, window_bounds = array<i64: 1, 16, 128>}, {pipeline_mode = #tpu.pipeline_mode<synchronous>, transform_indices = @transform_9, window_bounds = array<i64: 16, 128>}, {transform_indices = @transform_10, window_bounds = array<i64: 1, 16, 128>}, {transform_indices = @transform_11, window_bounds = array<i64: 1, 16, 128>}]} {
    %c0_i32 = arith.constant 0 : i32
    %0 = arith.cmpi eq, %arg0, %c0_i32 : i32
    %1 = arith.extui %0 : i1 to i32
    %c0_i32_0 = arith.constant 0 : i32
    %2 = arith.cmpi ne, %1, %c0_i32_0 : i32
    scf.if %2 {
      %c0_31 = arith.constant 0 : index
      %c0_32 = arith.constant 0 : index
      %59 = vector.load %arg1[%c0_31, %c0_32] : memref<16x1xi32, #tpu.memory_space<vmem>>, vector<16x1xi32>
      %60 = tpu.iota {dimensions = array<i32: 1>} : vector<16x128xi32>
      %61 = vector.broadcast %59 : vector<16x1xi32> to vector<16x128xi32>
      %62 = arith.cmpi eq, %60, %61 : vector<16x128xi32>
      %63 = arith.extui %62 : vector<16x128xi1> to vector<16x128xi32>
      %64 = arith.sitofp %63 : vector<16x128xi32> to vector<16x128xf32>
      %65 = arith.truncf %64 : vector<16x128xf32> to vector<16x128xbf16>
      %c0_33 = arith.constant 0 : index
      %c0_34 = arith.constant 0 : index
      %66 = vector.load %arg2[%c0_33, %c0_34] : memref<128x128xbf16, #tpu.memory_space<vmem>>, vector<128x128xbf16>
      %cst_35 = arith.constant dense<0.000000e+00> : vector<16x128xf32>
      %67 = tpu.matmul %65, %66, %cst_35 {dimension_numbers = #tpu.dot_dimension_numbers<[1], [0], [0], [1], [0, 0, 1, 1], [], []>} : vector<16x128xbf16>, vector<128x128xbf16>, vector<16x128xf32> -> vector<16x128xf32>
      %c0_36 = arith.constant 0 : index
      %c0_37 = arith.constant 0 : index
      %68 = vector.load %arg13[%c0_36, %c0_37] : memref<16x128xf32, #tpu.memory_space<vmem>>, vector<16x128xf32>
      tpu.vector_store %arg13[%c0_36, %c0_37], %67 {strides = array<i32>} : memref<16x128xf32, #tpu.memory_space<vmem>>, vector<16x128xf32>,
    } else {
    }
    %c0 = arith.constant 0 : index
    %c0_1 = arith.constant 0 : index
    %3 = vector.load %arg13[%c0, %c0_1] : memref<16x128xf32, #tpu.memory_space<vmem>>, vector<16x128xf32>
    %c0_2 = arith.constant 0 : index
    %c0_3 = arith.constant 0 : index
    %c0_4 = arith.constant 0 : index
    %4 = vector.load %arg8[%c0_2, %c0_3, %c0_4] : memref<1x16x128xf32, #tpu.memory_space<vmem>>, vector<1x16x128xf32>
    %5 = vector.shape_cast %4 : vector<1x16x128xf32> to vector<16x128xf32>
    %c0_5 = arith.constant 0 : index
    %c0_6 = arith.constant 0 : index
    %c0_7 = arith.constant 0 : index
    %6 = vector.load %arg9[%c0_5, %c0_6, %c0_7] : memref<1x16x128xf32, #tpu.memory_space<vmem>>, vector<1x16x32xf32>
    %7 = vector.shape_cast %6 : vector<1x16x32xf32> to vector<16x32xf32>
    %8 = arith.truncf %3 : vector<16x128xf32> to vector<16x128xbf16>
    %c0_8 = arith.constant 0 : index
    %c0_9 = arith.constant 0 : index
    %c0_10 = arith.constant 0 : index
    %9 = vector.load %arg3[%c0_8, %c0_9, %c0_10] : memref<1x128x128xbf16, #tpu.memory_space<vmem>>, vector<1x128x128xbf16>
    %10 = vector.shape_cast %9 : vector<1x128x128xbf16> to vector<128x128xbf16>
    %cst = arith.constant dense<0.000000e+00> : vector<16x128xf32>
    %11 = tpu.matmul %8, %10, %cst {dimension_numbers = #tpu.dot_dimension_numbers<[1], [0], [0], [1], [0, 0, 1, 1], [], []>} : vector<16x128xbf16>, vector<128x128xbf16>, vector<16x128xf32> -> vector<16x128xf32>
    %12 = arith.truncf %5 : vector<16x128xf32> to vector<16x128xbf16>
    %c0_11 = arith.constant 0 : index
    %c0_12 = arith.constant 0 : index
    %c0_13 = arith.constant 0 : index
    %13 = vector.load %arg4[%c0_11, %c0_12, %c0_13] : memref<1x128x128xbf16, #tpu.memory_space<vmem>>, vector<1x128x128xbf16>
    %14 = vector.shape_cast %13 : vector<1x128x128xbf16> to vector<128x128xbf16>
    %cst_14 = arith.constant dense<0.000000e+00> : vector<16x128xf32>
    %15 = tpu.matmul %12, %14, %cst_14 {dimension_numbers = #tpu.dot_dimension_numbers<[1], [0], [0], [1], [0, 0, 1, 1], [], []>} : vector<16x128xbf16>, vector<128x128xbf16>, vector<16x128xf32> -> vector<16x128xf32>
    %16 = arith.addf %11, %15 : vector<16x128xf32>
    %c0_15 = arith.constant 0 : index
    %c0_16 = arith.constant 0 : index
    %c0_17 = arith.constant 0 : index
    %17 = vector.load %arg5[%c0_15, %c0_16, %c0_17] : memref<1x1x128xf32, #tpu.memory_space<vmem>>, vector<1x1x128xf32>
    %18 = vector.shape_cast %17 : vector<1x1x128xf32> to vector<1x128xf32>
    %19 = vector.broadcast %18 : vector<1x128xf32> to vector<16x128xf32>
    %20 = arith.addf %16, %19 : vector<16x128xf32>
    %21 = vector.extract_strided_slice %20 {offsets = [0, 0], sizes = [16, 32], strides = [1, 1]} : vector<16x128xf32> to vector<16x32xf32>
    %22 = arith.negf %21 : vector<16x32xf32>
    %23 = math.exp %22 : vector<16x32xf32>
    %cst_18 = arith.constant 1.000000e+00 : f32
    %24 = vector.broadcast %cst_18 : f32 to vector<16x32xf32>
    %25 = arith.addf %24, %23 : vector<16x32xf32>
    %26 = arith.divf %24, %25 : vector<16x32xf32>
    %27 = vector.extract_strided_slice %20 {offsets = [0, 32], sizes = [16, 32], strides = [1, 1]} : vector<16x128xf32> to vector<16x32xf32>
    %28 = arith.negf %27 : vector<16x32xf32>
    %29 = math.exp %28 : vector<16x32xf32>
    %cst_19 = arith.constant 1.000000e+00 : f32
    %30 = vector.broadcast %cst_19 : f32 to vector<16x32xf32>
    %31 = arith.addf %30, %29 : vector<16x32xf32>
    %32 = arith.divf %30, %31 : vector<16x32xf32>
    %33 = vector.extract_strided_slice %20 {offsets = [0, 64], sizes = [16, 32], strides = [1, 1]} : vector<16x128xf32> to vector<16x32xf32>
    %34 = math.tanh %33 : vector<16x32xf32>
    %35 = vector.extract_strided_slice %20 {offsets = [0, 96], sizes = [16, 32], strides = [1, 1]} : vector<16x128xf32> to vector<16x32xf32>
    %36 = arith.negf %35 : vector<16x32xf32>
    %37 = math.exp %36 : vector<16x32xf32>
    %cst_20 = arith.constant 1.000000e+00 : f32
    %38 = vector.broadcast %cst_20 : f32 to vector<16x32xf32>
    %39 = arith.addf %38, %37 : vector<16x32xf32>
    %40 = arith.divf %38, %39 : vector<16x32xf32>
    %41 = arith.mulf %32, %7 : vector<16x32xf32>
    %42 = arith.mulf %26, %34 : vector<16x32xf32>
    %43 = arith.addf %41, %42 : vector<16x32xf32>
    %44 = math.tanh %43 : vector<16x32xf32>
    %45 = arith.mulf %40, %44 : vector<16x32xf32>
    %cst_21 = arith.constant 0.000000e+00 : f32
    %46 = vector.broadcast %cst_21 : f32 to vector<16x96xf32>
    %47 = tpu.concatenate %45, %46 in 1 : vector<16x32xf32>, vector<16x96xf32> -> vector<16x128xf32>
    %48 = tpu.concatenate %43, %46 in 1 : vector<16x32xf32>, vector<16x96xf32> -> vector<16x128xf32>
    %c0_22 = arith.constant 0 : index
    %c0_23 = arith.constant 0 : index
    %c0_24 = arith.constant 0 : index
    %49 = vector.load %arg11[%c0_22, %c0_23, %c0_24] : memref<1x16x128xf32, #tpu.memory_space<vmem>>, vector<1x16x128xf32>
    %50 = vector.shape_cast %49 : vector<1x16x128xf32> to vector<16x128xf32>
    %51 = vector.shape_cast %47 : vector<16x128xf32> to vector<1x16x128xf32>
    tpu.vector_store %arg11[%c0_22, %c0_23, %c0_24], %51 {strides = array<i32>} : memref<1x16x128xf32, #tpu.memory_space<vmem>>, vector<1x16x128xf32>,
    %c0_25 = arith.constant 0 : index
    %c0_26 = arith.constant 0 : index
    %c0_27 = arith.constant 0 : index
    %52 = vector.load %arg12[%c0_25, %c0_26, %c0_27] : memref<1x16x128xf32, #tpu.memory_space<vmem>>, vector<1x16x128xf32>
    %53 = vector.shape_cast %52 : vector<1x16x128xf32> to vector<16x128xf32>
    %54 = vector.shape_cast %48 : vector<16x128xf32> to vector<1x16x128xf32>
    tpu.vector_store %arg12[%c0_25, %c0_26, %c0_27], %54 {strides = array<i32>} : memref<1x16x128xf32, #tpu.memory_space<vmem>>, vector<1x16x128xf32>,
    %c0_28 = arith.constant 0 : index
    %c0_29 = arith.constant 0 : index
    %55 = vector.load %arg13[%c0_28, %c0_29] : memref<16x128xf32, #tpu.memory_space<vmem>>, vector<16x128xf32>
    tpu.vector_store %arg13[%c0_28, %c0_29], %47 {strides = array<i32>} : memref<16x128xf32, #tpu.memory_space<vmem>>, vector<16x128xf32>,
    %c1_i32 = arith.constant 1 : i32
    %56 = arith.cmpi eq, %arg0, %c1_i32 : i32
    %57 = arith.extui %56 : i1 to i32
    %c0_i32_30 = arith.constant 0 : i32
    %58 = arith.cmpi ne, %57, %c0_i32_30 : i32
    scf.if %58 {
      %59 = arith.truncf %47 : vector<16x128xf32> to vector<16x128xbf16>
      %c0_31 = arith.constant 0 : index
      %c0_32 = arith.constant 0 : index
      %60 = vector.load %arg6[%c0_31, %c0_32] : memref<128x128xbf16, #tpu.memory_space<vmem>>, vector<128x128xbf16>
      %cst_33 = arith.constant dense<0.000000e+00> : vector<16x128xf32>
      %61 = tpu.matmul %59, %60, %cst_33 {dimension_numbers = #tpu.dot_dimension_numbers<[1], [0], [0], [1], [0, 0, 1, 1], [], []>} : vector<16x128xbf16>, vector<128x128xbf16>, vector<16x128xf32> -> vector<16x128xf32>
      %c0_34 = arith.constant 0 : index
      %c0_35 = arith.constant 0 : index
      %62 = vector.load %arg7[%c0_34, %c0_35] : memref<1x128xf32, #tpu.memory_space<vmem>>, vector<1x128xf32>
      %63 = vector.broadcast %62 : vector<1x128xf32> to vector<16x128xf32>
      %64 = arith.addf %61, %63 : vector<16x128xf32>
      %c0_36 = arith.constant 0 : index
      %c0_37 = arith.constant 0 : index
      %65 = vector.load %arg10[%c0_36, %c0_37] : memref<16x128xf32, #tpu.memory_space<vmem>>, vector<16x128xf32>
      tpu.vector_store %arg10[%c0_36, %c0_37], %64 {strides = array<i32>} : memref<16x128xf32, #tpu.memory_space<vmem>>, vector<16x128xf32>,
    } else {
    }
    return
  }
  func.func @transform_0(%arg0: i32) -> (i32, i32) {
    %c0_i32 = arith.constant 0 : i32
    %c0_i32_0 = arith.constant 0 : i32
    %c0_i32_1 = arith.constant 0 : i32
    return %c0_i32, %c0_i32_0 : i32, i32
  }
  func.func @transform_1(%arg0: i32) -> (i32, i32) {
    %c0_i32 = arith.constant 0 : i32
    %c0_i32_0 = arith.constant 0 : i32
    %c0_i32_1 = arith.constant 0 : i32
    return %c0_i32, %c0_i32_0 : i32, i32
  }
  func.func @transform_2(%arg0: i32) -> (i32, i32, i32) {
    %c0_i32 = arith.constant 0 : i32
    %c0_i32_0 = arith.constant 0 : i32
    %c0_i32_1 = arith.constant 0 : i32
    return %arg0, %c0_i32, %c0_i32_0 : i32, i32, i32
  }
  func.func @transform_3(%arg0: i32) -> (i32, i32, i32) {
    %c0_i32 = arith.constant 0 : i32
    %c0_i32_0 = arith.constant 0 : i32
    %c0_i32_1 = arith.constant 0 : i32
    return %arg0, %c0_i32, %c0_i32_0 : i32, i32, i32
  }
  func.func @transform_4(%arg0: i32) -> (i32, i32, i32) {
    %c0_i32 = arith.constant 0 : i32
    %c0_i32_0 = arith.constant 0 : i32
    %c0_i32_1 = arith.constant 0 : i32
    return %arg0, %c0_i32, %c0_i32_0 : i32, i32, i32
  }
  func.func @transform_5(%arg0: i32) -> (i32, i32) {
    %c0_i32 = arith.constant 0 : i32
    %c0_i32_0 = arith.constant 0 : i32
    %c0_i32_1 = arith.constant 0 : i32
    return %c0_i32, %c0_i32_0 : i32, i32
  }
  func.func @transform_6(%arg0: i32) -> (i32, i32) {
    %c0_i32 = arith.constant 0 : i32
    %c0_i32_0 = arith.constant 0 : i32
    %c0_i32_1 = arith.constant 0 : i32
    return %c0_i32, %c0_i32_0 : i32, i32
  }
  func.func @transform_7(%arg0: i32) -> (i32, i32, i32) {
    %c0_i32 = arith.constant 0 : i32
    %c0_i32_0 = arith.constant 0 : i32
    %c0_i32_1 = arith.constant 0 : i32
    return %arg0, %c0_i32, %c0_i32_0 : i32, i32, i32
  }
  func.func @transform_8(%arg0: i32) -> (i32, i32, i32) {
    %c0_i32 = arith.constant 0 : i32
    %c0_i32_0 = arith.constant 0 : i32
    %c0_i32_1 = arith.constant 0 : i32
    return %arg0, %c0_i32, %c0_i32_0 : i32, i32, i32
  }
  func.func @transform_9(%arg0: i32) -> (i32, i32) {
    %c0_i32 = arith.constant 0 : i32
    %c0_i32_0 = arith.constant 0 : i32
    %c0_i32_1 = arith.constant 0 : i32
    return %c0_i32, %c0_i32_0 : i32, i32
  }
  func.func @transform_10(%arg0: i32) -> (i32, i32, i32) {
    %c0_i32 = arith.constant 0 : i32
    %c0_i32_0 = arith.constant 0 : i32
    %c0_i32_1 = arith.constant 0 : i32
    return %arg0, %c0_i32, %c0_i32_0 : i32, i32, i32
  }
  func.func @transform_11(%arg0: i32) -> (i32, i32, i32) {
    %c0_i32 = arith.constant 0 : i32
    %c0_i32_0 = arith.constant 0 : i32
    %c0_i32_1 = arith.constant 0 : i32
    return %arg0, %c0_i32, %c0_i32_0 : i32, i32, i32
  }
}

</mosaic_0001>

<bundles_post_ra>
// kernel: tpu_custom_call.1
= control target key start
LH: loop header
LB: loop body
LE: loop exit
PB: predicated region body
PF: predicated region fallthrough
CT: control target
= control target key end

     0   :  { %s2556_s0 = inlined_call_operand.vmem [shape: s32[16,1], index: 0, kind: input, shape index: {}]   ;;  %s2557_s1 = inlined_call_operand.hbm [shape: bf16[128,128], index: 1, kind: input, shape index: {}]   ;;  %s2558_s2 = inlined_call_operand.vmem [shape: bf16[2,128,128], index: 2, kind: input, shape index: {}]   ;;  %s2559_s3 = inlined_call_operand.hbm [shape: bf16[2,128,128], index: 3, kind: input, shape index: {}]   ;;  %s2560_s4 = inlined_call_operand.vmem [shape: f32[2,1,128], index: 4, kind: input, shape index: {}]   ;;  %s2561_s5 = inlined_call_operand.hbm [shape: bf16[128,128], index: 5, kind: input, shape index: {}]   ;;  %s2562_s6 = inlined_call_operand.vmem [shape: f32[1,128], index: 6, kind: input, shape index: {}]   ;;  %s2563_s7 = inlined_call_operand.hbm [shape: f32[2,16,128], index: 7, kind: input, shape index: {}, may-alias: {7,10}]   ;;  %s2564_s8 = inlined_call_operand.hbm [shape: f32[2,16,128], index: 8, kind: input, shape index: {}, may-alias: {8,11}]   ;;  %s2565_s9 = inlined_call_operand.hbm [shape: f32[16,128], index: 9, kind: output, shape index: {0}]   ;;  %s2566_s10 = inlined_call_operand.hbm [shape: f32[2,16,128], index: 10, kind: output, shape index: {1}, may-alias: {7,10}]   ;;  %s2567_s11 = inlined_call_operand.hbm [shape: f32[2,16,128], index: 11, kind: output, shape index: {2}, may-alias: {8,11}]  }
   0x1   :  { %2595 = sst [smem:[#allocation27_spill]] %s2556_s0 }
   0x2   :  { %2596 = sst [smem:[#allocation28_spill]] %s2558_s2 }
   0x3   :  { %2597 = sst [smem:[#allocation29_spill]] %s2560_s4 }
   0x4   :  { %2598 = sst [smem:[#allocation30_spill]] %s2561_s5 }
   0x5   :  { %2599 = sst [smem:[#allocation31_spill]] %s2562_s6 }
   0x6   :  { %2600 = sst [smem:[#allocation32_spill]] %s2563_s7 }
   0x7   :  { %2601 = sst [smem:[#allocation33_spill]] %s2565_s9 }
   0x8   :  { %2602 = sst [smem:[#allocation34_spill]] %s2566_s10 }
   0x9   :  { %2603 = sst [smem:[#allocation35_spill]] %s2567_s11 }
   0xa   :  { %17 = vsyncpa [#allocation4], 0 }
   0xb   :  { %18 = vsyncpa [#allocation7], 0 }
   0xc   :  { %20 = vsyncpa [#allocation7 + $0x1], 0 }
   0xd   :  { %21 = vsyncpa [#allocation10], 0 }
   0xe   :  { %23 = vsyncpa [#allocation10 + $0x1], 0 }
   0xf   :  { %24 = vsyncpa [#allocation5], 0 }
  0x10   :  { %25 = vsyncpa [#allocation14], 0 }
  0x11   :  { %27 = vsyncpa [#allocation14 + $0x1], 0  ;;  %s2082_s17 = smov 0   ;;  %s2084_s18 = smov 0  }
  0x12   :  { %s2086_s19 = smov 0   ;;  %s2088_s20 = smov 0  }
  0x13 LB: > { %2604 = sst [smem:[#allocation22_spill]] %s1991_s19  ;;  %s2101_s21 = sadd.s32 4294967295, %s1995_s20   ;;  %s1995_s20 = sphi %s2088_s20, %s2654_s20   ;;  %s1991_s19 = sphi %s2086_s19, %s2659_s19   ;;  %s1987_s18 = sphi %s2084_s18, %s2658_s18   ;;  %s1983_s17 = sphi %s2082_s17, %s2657_s17  }
  0x14   : > { %s2568_s22 = sadd.s32 4294967294, %s1995_s20   ;;  %p121_p0 = scmp.ne.s32.totalorder %s1987_s18, %s1983_s17 }
  0x15   : > { %p2571_p1 = scmp.eq.s32.totalorder %s2101_s21, 0  ;;  %p292_p3 = scmp.eq.s32.totalorder %s2568_s22, 1 }
  0x16   : > { %p1358_p5 = scmp.ge.s32.totalorder %s1995_s20, 1  ;;  %p325_p7 = scmp.lt.s32.totalorder %s1995_s20, 3 }
  0x17   : > { %p2111_p4 = por %p2571_p1, %p121_p0  ;;  %p2116_p6 = por %p292_p3, %p121_p0 }
  0x18   : > { %p2122_p9 = pnand %p1358_p5, %p325_p7  ;;  %s1997_s26 = smov [#allocation8]  }
  0x19   : > { %s2605_s23 = scalar_select %p2111_p4, 1, 0 }
  0x1a   : > { %s2606_s24 = scalar_select %p2116_p6, 1, 0 }
  0x1b   : > { %s2608_s25 = scalar_select %p2122_p9, 1, 0 }
  0x1c   : > { %2607 = sst [smem:[#allocation23_spill]] %s2606_s24  ;;  %p1580_p11 = pneg %p2122_p9 }
  0x1d   : > { %s353_s27 = sshll.u32 %s1997_s26, 4  ;;  %s2136_s29 = sadd.s32 1, %s1995_s20   ;;  %s354_s27 = int_to_ptr.vmem [resolvable:$true] %s353_s27 }
  0x1e   : > { %p2131_p12 = pnand %p1580_p11, %p2571_p1  ;;  %2610 = sst [smem:[#allocation24_spill]] %s2136_s29 }
  0x1f   : > { %s108_s30 = sadd.s32 1, %s1991_s19  ;;  %s105_s12 = ssub.s32 %s1995_s20, %s2136_s29 }
  0x20   : > { %s2609_s28 = scalar_select %p2131_p12, 1, 0 }
  0x21   : > { %s2611_s5 = sld [smem:[#allocation30_spill]]  ;;  %p2582_p0 = pneg %p2131_p12 }
  0x27   : > { %s1713_s15 = scalar_lea.hbm %s2611_s5, 1024 }
  0x28   : > { %p1714_p13 = scmp.ne.s32.totalorder %s2611_s5, %s1713_s15  ;;  %p1720_p7 = scmp.lt.u32.totalorder %s1713_s15, %s2611_s5 }
  0x2a   : > { %p1716_p3 = pnand %p2582_p0, %p1714_p13 }
  0x2c   : > { %p1717_p5 = pneg %p1716_p3 }
  0x2e   : > { %p1722_p11 = pnand %p1720_p7, %p1717_p5 }
  0x30   : > { %1725 = shalt.err (!%p1722_p11)
}
  0x31   : > { %s1726_s29 = scalar_lea.vmem %s354_s27, 1024  ;;  %p1734_p2 = scmp.lt.s32.totalorder %s354_s27, %s354_s27 }
  0x32   : > { %p1727_p10 = scmp.ne.s32.totalorder %s354_s27, %s1726_s29  ;;  %p1735_p6 = scmp.lt.s32.totalorder %s1726_s29, %s1726_s29 }
  0x34   : > { %p1729_p8 = pnand %p1727_p10, %p2582_p0  ;;  %p1736_p4 = por %p1735_p6, %p1734_p2 }
  0x36   : > { %p1730_p1 = pneg %p1729_p8 }
  0x38   : > { %p1737_p9 = pnand %p1736_p4, %p1730_p1 }
  0x3a   : > { %1740 = shalt.err (!%p1737_p9)
}
  0x3b   : > { %s2575_s13 = smov 64   ;;  %s2577_s22 = smov 4  }
  0x3c   : > { %1586 = dma.hbm_to_vmem [thread:$0]  (!%p2131_p12), %s2611_s5, 1024, %s354_s27, [#allocation7], %s2575_s13, %s2575_s13, %s2577_s22  }
  0x3d   : > { %p106_p1 = scmp.eq.s32.totalorder %s105_s12, 0  ;;  %p115_p2 = scmp.ne.s32.totalorder %s1991_s19, %s1987_s18 }
  0x3e   : > { %p116_p4 = scmp.eq.s32.totalorder %s1995_s20, 0  ;;  %p1606_p6 = scmp.lt.s32.totalorder %s1995_s20, 2 }
  0x3f   : > { %s2171_s15 = scalar_select %p106_p1, %s1991_s19, %s108_s30  }
  0x40   : > { %p117_p8 = por %p116_p4, %p115_p2  ;;  %p2613_p9 = scmp.eq.s32.totalorder %s2101_s21, 1 }
  0x41   : > { %2612 = sst [smem:[#allocation25_spill]] %s2171_s15  ;;  %s380_s26 = sand.u32 1, %s1991_s19  }
  0x42   : > { %p2175_p10 = por %p2613_p9, %p115_p2  ;;  %s2181_s24 = sshll.u32 %s380_s26, 6 }
  0x43   : > { %p2183_p13 = pnand %p1606_p6, %p117_p8  ;;  %s2187_s27 = sshll.u32 %s380_s26, 4 }
  0x44   : > { %s2614_s16 = scalar_select %p2175_p10, 1, 0 }
  0x45   : > { %s2616_s29 = scalar_select %p2183_p13, 1, 0 }
  0x46   : > { %2615 = sst [smem:[#allocation26_spill]] %s2614_s16  ;;  %s2580_s30 = sshll.u32 %s1995_s20, 8 }
  0x47   : > { %s2617_s7 = sld [smem:[#allocation32_spill]]  ;;  %s409_s22 = scalar_lea.vmem [#allocation9], %s2187_s27 }
  0x48   : > { %s416_s17 = sshll.u32 %s409_s22, 4  ;;  %s2618_s5 = sand.u32 1, %s1995_s20   ;;  %s2198_s17 = int_to_ptr.vmem [resolvable:$true] %s416_s17 }
  0x49   : > { %s2202_s15 = scalar_lea.sflag [#allocation10], %s2618_s5  ;;  %p2208_p5 = pneg %p2183_p13 }
  0x4b   : > { %s2619_s19 = scalar_select %p2208_p5, 1, 0 }
  0x4d   : > { %s2195_s13 = scalar_lea.hbm %s2617_s7, %s2580_s30  ;;  %s1746_s22 = scalar_lea.hbm %s2617_s7, 512 }
  0x4e   : > { %s1741_s26 = scalar_lea.hbm %s2195_s13, 256  ;;  %p1747_p1 = scmp.lt.u32.totalorder %s2195_s13, %s2617_s7 }
  0x4f   : > { %p1742_p3 = scmp.ne.s32.totalorder %s2195_s13, %s1741_s26  ;;  %p1748_p2 = scmp.lt.u32.totalorder %s1746_s22, %s1741_s26 }
  0x50   : > { %p1750_p6 = scmp.lt.u32.totalorder %s1741_s26, %s2195_s13 }
  0x51   : > { %p1744_p7 = pnand %p2208_p5, %p1742_p3  ;;  %p1749_p4 = por %p1748_p2, %p1747_p1 }
  0x53   : > { %p1745_p11 = pneg %p1744_p7  ;;  %p1751_p8 = por %p1750_p6, %p1749_p4 }
  0x55   : > { %p1752_p9 = pnand %p1751_p8, %p1745_p11 }
  0x57   : > { %1755 = shalt.err (!%p1752_p9)
}
  0x58   : > { %s1756_s5 = scalar_lea.vmem %s2198_s17, 256  ;;  %s2000_s12 = smov [#allocation9]  }
  0x59   : > { %p1757_p3 = scmp.ne.s32.totalorder %s2198_s17, %s1756_s5  ;;  %s1761_s14 = sshll.u32 %s2000_s12, 4  ;;  %s1762_s14 = int_to_ptr.vmem [resolvable:$false] %s1761_s14 }
  0x5a   : > { %s1763_s9 = scalar_lea.vmem %s1762_s14, 512  ;;  %p1764_p10 = scmp.lt.s32.totalorder %s2198_s17, %s1762_s14 }
  0x5b   : > { %p1759_p7 = pnand %p1757_p3, %p2208_p5  ;;  %p1765_p12 = scmp.lt.s32.totalorder %s1763_s9, %s1756_s5 }
  0x5d   : > { %p1760_p0 = pneg %p1759_p7  ;;  %p1766_p1 = por %p1765_p12, %p1764_p10 }
  0x5f   : > { %p1767_p2 = pnand %p1766_p1, %p1760_p0 }
  0x61   : > { %1770 = shalt.err (!%p1767_p2)
}
  0x62   : > { %s2001_s30 = smov 128   ;;  %s2002_s26 = smov 8  }
  0x63   : > { %1593 = dma.hbm_to_vmem [thread:$0]  (!%p2183_p13), %s2195_s13, 256, %s2198_s17, %s2202_s15, %s2001_s30, %s2001_s30, %s2002_s26  }
  0x64   : > { %s2620_s22 = sshll.u32 %s1995_s20, 8  ;;  %s430_s9 = scalar_lea.vmem [#allocation11], %s2187_s27 }
  0x65   : > { %s2240_s14 = scalar_lea.hbm %s2564_s8, %s2620_s22  ;;  %s437_s7 = sshll.u32 %s430_s9, 4  ;;  %s2243_s7 = int_to_ptr.vmem [resolvable:$true] %s437_s7 }
  0x66   : > { %s2003_s11 = smov [#allocation3]   ;;  %s1436_s16 = sshll.u32 %s1995_s20, 10 }
  0x67   : > { %s340_s10 = sshll.u32 %s2003_s11, 4  ;;  %s1771_s2 = scalar_lea.hbm %s2557_s1, 1024  ;;  %s341_s10 = int_to_ptr.vmem [resolvable:$true] %s340_s10 }
  0x68   : > { %p1772_p12 = scmp.ne.s32.totalorder %s2557_s1, %s1771_s2  ;;  %p2621_p0 = scmp.ne.s32.totalorder %s2609_s28, 0 }
  0x69   : > { %p1778_p6 = scmp.lt.u32.totalorder %s1771_s2, %s2557_s1 }
  0x6a   : > { %p2622_p10 = pneg %p2621_p0 }
  0x6c   : > { %p1774_p11 = pnand %p1772_p12, %p2622_p10 }
  0x6e   : > { %p1775_p4 = pneg %p1774_p11 }
  0x70   : > { %p1780_p8 = pnand %p1778_p6, %p1775_p4 }
  0x72   : > { %1783 = shalt.err (!%p1780_p8)
}
  0x73   : > { %s1784_s11 = scalar_lea.vmem %s341_s10, 1024  ;;  %p2623_p3 = pmov %p2622_p10 }
  0x74   : > { %p1785_p9 = scmp.ne.s32.totalorder %s341_s10, %s1784_s11  ;;  %p1792_p2 = scmp.lt.s32.totalorder %s341_s10, %s341_s10 }
  0x75   : > { %p1793_p13 = scmp.lt.s32.totalorder %s1784_s11, %s1784_s11 }
  0x76   : > { %p1787_p7 = pnand %p1785_p9, %p2623_p3 }
  0x77   : > { %p1794_p5 = por %p1793_p13, %p1792_p2 }
  0x78   : > { %p1788_p1 = pneg %p1787_p7 }
  0x7a   : > { %p1795_p10 = pnand %p1794_p5, %p1788_p1 }
  0x7c   : > { %1798 = shalt.err (!%p1795_p10)
}
  0x7d   : > { %s2624_s0 = smov 4   ;;  %s2625_s4 = smov 64  }
  0x7e   : > { %1583 = dma.hbm_to_vmem [thread:$0]  (!%p2621_p0), %s2557_s1, 1024, %s341_s10, [#allocation4], %s2625_s4, %s2625_s4, %s2624_s0  }
  0x7f   : > { %s2272_s12 = scalar_lea.hbm %s2559_s3, %s1436_s16  ;;  %s382_s28 = scalar_lea.vmem [#allocation6], %s2181_s24 }
  0x80   : > { %s389_s9 = sshll.u32 %s382_s28, 4  ;;  %s2626_s13 = sand.u32 1, %s1995_s20   ;;  %s2275_s9 = int_to_ptr.vmem [resolvable:$true] %s389_s9 }
  0x81   : > { %s2279_s17 = scalar_lea.sflag [#allocation7], %s2626_s13  ;;  %s1799_s27 = scalar_lea.hbm %s2272_s12, 1024 }
  0x82   : > { %p1800_p13 = scmp.ne.s32.totalorder %s2272_s12, %s1799_s27  ;;  %p2627_p5 = scmp.ne.s32.totalorder %s2619_s19, 0 }
  0x83   : > { %s1804_s16 = scalar_lea.hbm %s2559_s3, 2048  ;;  %p1805_p11 = scmp.lt.u32.totalorder %s2272_s12, %s2559_s3 }
  0x84   : > { %p1802_p12 = pnand %p1800_p13, %p2627_p5  ;;  %p1806_p4 = scmp.lt.u32.totalorder %s1804_s16, %s1799_s27 }
  0x85   : > { %p1808_p8 = scmp.lt.u32.totalorder %s1799_s27, %s2272_s12 }
  0x86   : > { %p1803_p0 = pneg %p1802_p12  ;;  %p1807_p6 = por %p1806_p4, %p1805_p11 }
  0x88   : > { %p1809_p9 = por %p1808_p8, %p1807_p6 }
  0x8a   : > { %p1810_p3 = pnand %p1809_p9, %p1803_p0 }
  0x8c   : > { %1813 = shalt.err (!%p1810_p3)
}
  0x8d   : > { %s1814_s24 = scalar_lea.vmem %s2275_s9, 1024  ;;  %s2004_s22 = smov [#allocation6]  }
  0x8e   : > { %p1815_p7 = scmp.ne.s32.totalorder %s2275_s9, %s1814_s24  ;;  %s1819_s5 = sshll.u32 %s2004_s22, 4  ;;  %s1820_s5 = int_to_ptr.vmem [resolvable:$false] %s1819_s5 }
  0x8f   : > { %s1821_s28 = scalar_lea.vmem %s1820_s5, 2048  ;;  %p1822_p10 = scmp.lt.s32.totalorder %s2275_s9, %s1820_s5 }
  0x90   : > { %p1817_p1 = pnand %p1815_p7, %p2627_p5  ;;  %p1823_p13 = scmp.lt.s32.totalorder %s1821_s28, %s1814_s24 }
  0x92   : > { %p1818_p2 = pneg %p1817_p1  ;;  %p1824_p12 = por %p1823_p13, %p1822_p10 }
  0x94   : > { %p1825_p11 = pnand %p1824_p12, %p1818_p2 }
  0x96   : > { %1828 = shalt.err (!%p1825_p11)
}
  0x97   : > { %p2628_p0 = scmp.ne.s32.totalorder %s2616_s29, 0  ;;  %s1829_s13 = scalar_lea.hbm %s2240_s14, 256 }
  0x98   : > { %p1830_p4 = scmp.ne.s32.totalorder %s2240_s14, %s1829_s13  ;;  %s1834_s11 = scalar_lea.hbm %s2564_s8, 512 }
  0x99   : > { %1590 = dma.hbm_to_vmem [thread:$0]  (!%p2628_p0), %s2272_s12, 1024, %s2275_s9, %s2279_s17, %s2625_s4, %s2625_s4, %s2624_s0  }
  0x9a   : > { %p1832_p6 = pnand %p1830_p4, %p2627_p5  ;;  %p1835_p9 = scmp.lt.u32.totalorder %s2240_s14, %s2564_s8 }
  0x9b   : > { %p1836_p3 = scmp.lt.u32.totalorder %s1834_s11, %s1829_s13  ;;  %p1838_p1 = scmp.lt.u32.totalorder %s1829_s13, %s2240_s14 }
  0x9c   : > { %p1833_p8 = pneg %p1832_p6 }
  0x9d   : > { %p1837_p7 = por %p1836_p3, %p1835_p9 }
  0x9f   : > { %p1839_p2 = por %p1838_p1, %p1837_p7 }
  0xa1   : > { %p1840_p10 = pnand %p1839_p2, %p1833_p8 }
  0xa3   : > { %1843 = shalt.err (!%p1840_p10)
}
  0xa4   : > { %s1844_s0 = scalar_lea.vmem %s2243_s7, 256  ;;  %s2005_s4 = smov [#allocation11]  }
  0xa5   : > { %p1845_p13 = scmp.ne.s32.totalorder %s2243_s7, %s1844_s0  ;;  %s1849_s12 = sshll.u32 %s2005_s4, 4  ;;  %s1850_s12 = int_to_ptr.vmem [resolvable:$false] %s1849_s12 }
  0xa6   : > { %s1851_s9 = scalar_lea.vmem %s1850_s12, 512  ;;  %p1852_p4 = scmp.lt.s32.totalorder %s2243_s7, %s1850_s12 }
  0xa7   : > { %p1847_p12 = pnand %p1845_p13, %p2627_p5  ;;  %p1853_p6 = scmp.lt.s32.totalorder %s1851_s9, %s1844_s0 }
  0xa9   : > { %p1848_p11 = pneg %p1847_p12  ;;  %p1854_p9 = por %p1853_p6, %p1852_p4 }
  0xab   : > { %p1855_p3 = pnand %p1854_p9, %p1848_p11 }
  0xad   : > { %1858 = shalt.err (!%p1855_p3)
}
  0xae   : > { %1596 = dma.hbm_to_vmem [thread:$0]  (!%p2628_p0), %s2240_s14, 256, %s2243_s7, %s2202_s15, %s2001_s30, %s2001_s30, %s2002_s26  }
  0xaf   : > { %p2629_p5 = scmp.ne.s32.totalorder %s2608_s25, 0 }
  0xb0   : > { %p2630_p8 = scmp.eq.s32.totalorder (!%p2629_p5), %s2101_s21, 0 }
  0xb1   : > { %449 = sbr.rel (%p2629_p5) target bundleno = 1602 (0x642), region = 56 }
  0xb8   : > { %1958 = dma.done.wait (%p2630_p8), [#allocation4], 1024   ;;  %p2631_p7 = pmov %p2630_p8 }
  0xb9   : > { %s2338_s19 = sand.u32 1, %s2101_s21   ;;  %s457_s29 = sand.u32 1, %s1987_s18  }
  0xba   : > { %1960 = vsyncadd (%p2631_p7), [#allocation4], 4294966272  ;;  %s1373_s17 = sshll.u32 %s457_s29, 6  ;;  %s456_s6 = scalar_lea.sflag [#allocation7], %s2338_s19 }
  0xbb   : > { %s2342_s24 = scalar_lea.vmem [#allocation6], %s1373_s17  ;;  %p2632_p0 = scmp.ne.s32.totalorder %s2605_s23, 0 }
  0xbd   : > { %1962 = dma.done.wait (%p2632_p0), %s456_s6, 1024  }
  0xbe   : > { %1964 = vsyncadd (%p2632_p0), %s456_s6, 4294966272  ;;  %p2633_p1 = pmov %p2631_p7 }
  0xc0   : > { %1966 = dma.done.wait (%p2633_p1), [#allocation7], 1024   ;;  %p2634_p2 = pmov %p2633_p1 }
  0xc1   : > { %s2352_s7 = sshll.u32 %s457_s29, 4  ;;  %s469_s25 = scalar_lea.sflag [#allocation10], %s2338_s19 }
  0xc2   : > { %1968 = vsyncadd (%p2634_p2), [#allocation7], 4294966272  ;;  %s472_s15 = scalar_lea.vmem [#allocation9], %s2352_s7 }
  0xc3   : > { %1970 = dma.done.wait (%p2632_p0), %s469_s25, 512  }
  0xc4   : > { %1972 = vsyncadd (%p2632_p0), %s469_s25, 4294966784  ;;  %p543_p10 = scmp.lt.s32.totalorder %s2101_s21, 1  ;;  %s2635_s5 = sld [smem:[#allocation29_spill]] }
  0xc5   : > { %s2636_s10 = sld [smem:[#allocation28_spill]]  ;;  %s481_s11 = scalar_lea.vmem [#allocation11], %s2352_s7 }
  0xc6   : > { %s2362_s30 = scalar_select %p543_p10, %s2101_s21, 1 }
  0xc7   : > { %s2376_s16 = scalar_lea.vmem [#allocation13], %s2352_s7  ;;  %s2379_s2 = scalar_lea.vmem [#allocation15], %s2352_s7 }
  0xc8   : > { %s1439_s26 = sshll.u32 %s2362_s30, 6  ;;  %p2637_p13 = scmp.ne.s32.totalorder %s2101_s21, 0 }
  0xc9   : > { %s2638_s12 = sld [smem:[#allocation27_spill]] (!%p2637_p13)  ;;  %v2006_v1 = vmov (!%p2637_p13), 0   ;;  %v2007_v2 = vmov (!%p2637_p13), 0.0   ;;  %v1665_v3 = vld [vmem:[#allocation3] sm:$0xff] (!%p2637_p13)   ;;  %v1666_v5 = vld [vmem:[#allocation3 + $0x8] sm:$0xff] (!%p2637_p13)   ;;  %v1667_v6 = vld [vmem:[#allocation3 + $0x10] sm:$0xff] (!%p2637_p13)   ;;  %v558_v12 = vlaneseq (!%p2637_p13) }
  0xca   : > { %s550_s28 = scalar_lea.vmem %s2635_s5, %s2362_s30  ;;  %555 = sbr.rel (%p2637_p13) target bundleno = 557 (0x22d), region = 80  ;;  %1664 = vset.pattern.permute.xlu0 (!%p2637_p13), %v2006_v1  ;;  %1478 = vmatprep.subr.bf16.mxu0 (!%p2637_p13), %v2007_v2  ;;  %vm2008_vm0 = vmmov (!%p2637_p13), 0   ;;  %v1668_v7 = vld [vmem:[#allocation3 + $0x18] sm:$0xff] (!%p2637_p13)   ;;  %v1669_v8 = vld [vmem:[#allocation3 + $0x20] sm:$0xff] (!%p2637_p13)   ;;  %v1670_v9 = vld [vmem:[#allocation3 + $0x28] sm:$0xff] (!%p2637_p13)  }
  0xcb   : > { %s2372_s23 = scalar_lea.vmem %s2636_s10, %s1439_s26  ;;  %1479 = vmatpush3.bf16.msra.mxu0 (!%p2637_p13), %v1665_v3  ;;  %1494 = vmatprep.mubr.msk.bf16.mxu0 (!%p2637_p13), %vm2008_vm0, %v2007_v2  ;;  %v1671_v10 = vld [vmem:[#allocation3 + $0x30] sm:$0xff] (!%p2637_p13)   ;;  %v1672_v11 = vld [vmem:[#allocation3 + $0x38] sm:$0xff] (!%p2637_p13)   ;;  %v559_v14 = vand.u32 (!%p2637_p13), 127, %v558_v12  ;;  %v2009_v16 = vmov (!%p2637_p13), 1.0|1.0  }
  0xcc   : > { %1480 = vmatprep.subr.bf16.mxu0 (!%p2637_p13), %v2007_v2 }
  0xcf   : > { %v556_v0 = vld [vmem:[%s2638_s12] sm:$0xff] (!%p2637_p13)  ;;  %v557_v4 = vld [vmem:[%s2638_s12 + $0x8] sm:$0xff] (!%p2637_p13)  ;;  %1481 = vmatpush3.bf16.msra.mxu0 (!%p2637_p13), %v1666_v5 }
  0xd0   : > { %561 = vperm.xlu0 (!%p2637_p13), %1664, %v556_v0   ;;  %1482 = vmatprep.subr.bf16.mxu0 (!%p2637_p13), %v2007_v2 }
  0xd3   : > { %1483 = vmatpush3.bf16.msra.mxu0 %v1667_v6 }
  0xd4   : > { %564 = vperm.xlu0 %1664, %v557_v4   ;;  %1484 = vmatprep.subr.bf16.mxu0 %v2007_v2 }
  0xd7   : > { %1485 = vmatpush3.bf16.msra.mxu0 %v1668_v7 }
  0xd8   : > { %1486 = vmatprep.subr.bf16.mxu0 %v2007_v2 }
  0xdb   : > { %1487 = vmatpush3.bf16.msra.mxu0 %v1669_v8 }
  0xdc   : > { %1488 = vmatprep.subr.bf16.mxu0 %v2007_v2 }
  0xdf   : > { %1489 = vmatpush3.bf16.msra.mxu0 %v1670_v9 }
  0xe0   : > { %1490 = vmatprep.subr.bf16.mxu0 %v2007_v2 }
  0xe3   : > { %1491 = vmatpush3.bf16.msra.mxu0 %v1671_v10 }
  0xe4   : > { %1492 = vmatprep.subr.bf16.mxu0 %v2007_v2 }
  0xe7   : > { %1493 = vmatpush3.bf16.msra.mxu0 %v1672_v11 }
 0x14f   : > { %v562_v13 = vpop.permute.xlu0 %561 }
 0x150   : > { %vm566_vm1 = vcmp.eq.s32.totalorder %v559_v14, %v562_v13 }
 0x153   : > { %v565_v15 = vpop.permute.xlu0 %564 }
 0x154   : > { %vm567_vm2 = vcmp.eq.s32.totalorder %v559_v14, %v565_v15 }
 0x155   : > { %vm1392_vm3 = vmpackc.low %vm567_vm2, %vm566_vm1 }
 0x156   : > { %1495 = vmatmul.mubr.msk.bf16.vlgmr.msra.gmra.mrb[0].mxu0 %vm1392_vm3, %v2009_v16 }
 0x229   : > { %v671_v17 = vpop.f32.mrb[0].mxu0 }
 0x22a   : > { %678 = vst [vmem:[#allocation2] sm:$0xff] %v671_v17  ;;  %v1496_v18 = vpop.f32.mrb[1].mxu0 }
 0x22b   : > { %v674_v19 = vpop.f32.mrb[2].mxu0 }
 0x22c   : > { %679 = vst [vmem:[#allocation2 + $0x8] sm:$0xff] %v674_v19  ;;  %v1497_v20 = vpop.f32.mrb[3].mxu0 }
 0x22d PF: > { %v1673_v21 = vld [vmem:[%s2342_s24] sm:$0xff]   ;;  %v2010_v22 = vmov 0.0   ;;  %v1674_v23 = vld [vmem:[%s2372_s23] sm:$0xff]   ;;  %v1675_v24 = vld [vmem:[%s2342_s24 + $0x8] sm:$0xff]   ;;  %vm2011_vm4 = vmmov 0   ;;  %s2012_s17 = smov 32  }
 0x22e   : > { %1498 = vmatprep.subr.bf16.mxu0 %v2010_v22  ;;  %1518 = vmatprep.subr.bf16.mxu1 %v2010_v22  ;;  %v1676_v25 = vld [vmem:[%s2372_s23 + $0x8] sm:$0xff]   ;;  %v1677_v26 = vld [vmem:[%s2342_s24 + $0x10] sm:$0xff]   ;;  %v1678_v27 = vld [vmem:[%s2372_s23 + $0x10] sm:$0xff]   ;;  %s2013_s7 = smov 64   ;;  %vm971_vm5 = vcmask 261120   ;;  %p1413_p12 = scmp.ne.s32.totalorder %s2101_s21, 1 }
 0x22f   : > { %1499 = vmatpush3.bf16.msra.mxu0 %v1673_v21  ;;  %1514 = vmatprep.mubr.msk.bf16.mxu0 %vm2011_vm4, %v2010_v22  ;;  %v1679_v28 = vld [vmem:[%s2342_s24 + $0x18] sm:$0xff]   ;;  %v1680_v29 = vld [vmem:[%s2372_s23 + $0x18] sm:$0xff]   ;;  %v1681_v30 = vld [vmem:[%s2342_s24 + $0x20] sm:$0xff]   ;;  %vm2016_vm6 = vmmov (!%p1413_p12), 0   ;;  %s2640_s14 = sld [smem:[#allocation31_spill]] (!%p1413_p12) }
 0x230   : > { %1519 = vmatpush3.bf16.msra.mxu1 %v1674_v23  ;;  %1500 = vmatprep.subr.bf16.mxu0 %v2010_v22  ;;  %v1682_v31 = vld [vmem:[%s2372_s23 + $0x20] sm:$0xff]   ;;  %v1683_v33 = vld [vmem:[%s2342_s24 + $0x28] sm:$0xff]   ;;  %v1684_v34 = vld [vmem:[%s2372_s23 + $0x28] sm:$0xff]  }
 0x231   : > { %1520 = vmatprep.subr.bf16.mxu1 %v2010_v22  ;;  %1534 = vmatprep.mubr.msk.bf16.mxu1 %vm2011_vm4, %v2010_v22  ;;  %v684_v32 = vld [vmem:[%s481_s11] sm:$0xff]  ;;  %v685_v35 = vld [vmem:[%s481_s11 + $0x8] sm:$0xff]  ;;  %vm1423_vm7 = vmpackc.low (!%p1413_p12), %vm971_vm5, %vm971_vm5 }
 0x232   : > { %923 = vrot.lane.b32.xlu1 %v684_v32, %s2012_s17  ;;  %v1685_v36 = vld [vmem:[%s2342_s24 + $0x30] sm:$0xff]   ;;  %v1686_v37 = vld [vmem:[%s2372_s23 + $0x30] sm:$0xff]   ;;  %v1687_v38 = vld [vmem:[%s2342_s24 + $0x38] sm:$0xff]   ;;  %v2015_v32 = vmov (!%p1413_p12), 0.0  }
 0x233   : > { %1501 = vmatpush3.bf16.msra.mxu0 %v1675_v24  ;;  %v682_v39 = vld [vmem:[%s472_s15] sm:$0xff]  ;;  %v683_v40 = vld [vmem:[%s472_s15 + $0x8] sm:$0xff]  ;;  %s2014_s15 = smov 96  }
 0x234   : > { %1521 = vmatpush3.bf16.msra.mxu1 %v1676_v25  ;;  %1502 = vmatprep.subr.bf16.mxu0 %v2010_v22  ;;  %v1688_v41 = vld [vmem:[%s2372_s23 + $0x38] sm:$0xff]   ;;  %v680_v42 = vld [vmem:[#allocation2] sm:$0xff]  ;;  %v681_v43 = vld [vmem:[#allocation2 + $0x8] sm:$0xff]  ;;  %v703_v44 = vpack.c.bf16 %v683_v40, %v682_v39 }
 0x235   : > { %1522 = vmatprep.subr.bf16.mxu1 %v2010_v22  ;;  %v686_v45 = vpack.c.bf16 %v681_v43, %v680_v42  ;;  %v1410_v48 = vld [vmem:[%s550_s28] ss:$0 sm:$0xff]  ;;  %v1712_v39 = vld [vmem:[#allocation8 + $0x38] sm:$0xff] (!%p1413_p12)  }
 0x236   : > { %925 = vrot.lane.b32.xlu1 %v685_v35, %s2012_s17  ;;  %v1708_v35 = vld [vmem:[#allocation8 + $0x18] sm:$0xff] (!%p1413_p12)  }
 0x237   : > { %1503 = vmatpush3.bf16.msra.mxu0 %v1677_v26 }
 0x238   : > { %1523 = vmatpush3.bf16.msra.mxu1 %v1678_v27  ;;  %1504 = vmatprep.subr.bf16.mxu0 %v2010_v22 }
 0x239   : > { %1524 = vmatprep.subr.bf16.mxu1 %v2010_v22 }
 0x23b   : > { %1505 = vmatpush3.bf16.msra.mxu0 %v1679_v28 }
 0x23c   : > { %1525 = vmatpush3.bf16.msra.mxu1 %v1680_v29  ;;  %1506 = vmatprep.subr.bf16.mxu0 %v2010_v22 }
 0x23d   : > { %1526 = vmatprep.subr.bf16.mxu1 %v2010_v22 }
 0x23f   : > { %1507 = vmatpush3.bf16.msra.mxu0 %v1681_v30 }
 0x240   : > { %1527 = vmatpush3.bf16.msra.mxu1 %v1682_v31  ;;  %1508 = vmatprep.subr.bf16.mxu0 %v2010_v22  ;;  %v1705_v31 = vld [vmem:[#allocation8] sm:$0xff] (!%p1413_p12)  }
 0x241   : > { %1528 = vmatprep.subr.bf16.mxu1 %v2010_v22 }
 0x243   : > { %1509 = vmatpush3.bf16.msra.mxu0 %v1683_v33  ;;  %v1706_v33 = vld [vmem:[#allocation8 + $0x8] sm:$0xff] (!%p1413_p12)  }
 0x244   : > { %1529 = vmatpush3.bf16.msra.mxu1 %v1684_v34  ;;  %1510 = vmatprep.subr.bf16.mxu0 %v2010_v22  ;;  %v1707_v34 = vld [vmem:[#allocation8 + $0x10] sm:$0xff] (!%p1413_p12)  }
 0x245   : > { %1530 = vmatprep.subr.bf16.mxu1 %v2010_v22 }
 0x247   : > { %1511 = vmatpush3.bf16.msra.mxu0 %v1685_v36  ;;  %v1709_v36 = vld [vmem:[#allocation8 + $0x20] sm:$0xff] (!%p1413_p12)  }
 0x248   : > { %1531 = vmatpush3.bf16.msra.mxu1 %v1686_v37  ;;  %1512 = vmatprep.subr.bf16.mxu0 %v2010_v22  ;;  %v1710_v37 = vld [vmem:[#allocation8 + $0x28] sm:$0xff] (!%p1413_p12)  }
 0x249   : > { %1532 = vmatprep.subr.bf16.mxu1 %v2010_v22 }
 0x24b   : > { %1513 = vmatpush3.bf16.msra.mxu0 %v1687_v38  ;;  %v1711_v38 = vld [vmem:[#allocation8 + $0x30] sm:$0xff] (!%p1413_p12)  }
 0x24c   : > { %1533 = vmatpush3.bf16.msra.mxu1 %v1688_v41  ;;  %1538 = vmatprep.subr.bf16.mxu0 (!%p1413_p12), %v2015_v32  ;;  %v1414_v41 = vld [vmem:[%s2640_s14] ss:$0 sm:$0xff] (!%p1413_p12) }
 0x24e   : > { %1515 = vmatmul.mubr.bf16.vlgmr.msra.gmra.mrb[0].mxu0 %v703_v44 }
 0x24f   : > { %1535 = vmatmul.mubr.bf16.vlgmr.msra.gmra.mrb[0].mxu1 %v686_v45  ;;  %1539 = vmatpush3.bf16.msra.mxu0 (!%p1413_p12), %v1705_v31 }
 0x250   : > { %1554 = vmatprep.mubr.msk.bf16.mxu0 (!%p1413_p12), %vm2016_vm6, %v2015_v32  ;;  %1540 = vmatprep.subr.bf16.mxu0 (!%p1413_p12), %v2015_v32 }
 0x253   : > { %1541 = vmatpush3.bf16.msra.mxu0 (!%p1413_p12), %v1706_v33 }
 0x254   : > { %1542 = vmatprep.subr.bf16.mxu0 (!%p1413_p12), %v2015_v32 }
 0x257   : > { %1543 = vmatpush3.bf16.msra.mxu0 (!%p1413_p12), %v1707_v34 }
 0x258   : > { %1544 = vmatprep.subr.bf16.mxu0 (!%p1413_p12), %v2015_v32 }
 0x25b   : > { %1545 = vmatpush3.bf16.msra.mxu0 (!%p1413_p12), %v1708_v35 }
 0x25c   : > { %1546 = vmatprep.subr.bf16.mxu0 (!%p1413_p12), %v2015_v32 }
 0x25f   : > { %1547 = vmatpush3.bf16.msra.mxu0 (!%p1413_p12), %v1709_v36 }
 0x260   : > { %1548 = vmatprep.subr.bf16.mxu0 (!%p1413_p12), %v2015_v32 }
 0x263   : > { %1549 = vmatpush3.bf16.msra.mxu0 (!%p1413_p12), %v1710_v37 }
 0x264   : > { %1550 = vmatprep.subr.bf16.mxu0 (!%p1413_p12), %v2015_v32 }
 0x267   : > { %1551 = vmatpush3.bf16.msra.mxu0 (!%p1413_p12), %v1711_v38 }
 0x268   : > { %1552 = vmatprep.subr.bf16.mxu0 (!%p1413_p12), %v2015_v32 }
 0x26b   : > { %1553 = vmatpush3.bf16.msra.mxu0 (!%p1413_p12), %v1712_v39 }
 0x2a4   : > { %v924_v9 = vpop.permute.xlu1 %923 }
 0x2a8   : > { %v926_v11 = vpop.permute.xlu1 %925 }
 0x321   : > { %v802_v46 = vpop.f32.mrb[0].mxu0 }
 0x322   : > { %v891_v47 = vpop.f32.mrb[0].mxu1  ;;  %v1516_v49 = vpop.f32.mrb[1].mxu0 }
 0x323   : > { %v892_v50 = vadd.f32 %v891_v47, %v802_v46  ;;  %v1536_v51 = vpop.f32.mrb[1].mxu1  ;;  %v805_v52 = vpop.f32.mrb[2].mxu0 }
 0x324   : > { %v894_v53 = vpop.f32.mrb[2].mxu1  ;;  %v1517_v54 = vpop.f32.mrb[3].mxu0 }
 0x325   : > { %v905_v55 = vadd.f32 %v1410_v48, %v892_v50  ;;  %v895_v56 = vadd.f32 %v894_v53, %v805_v52  ;;  %v1537_v57 = vpop.f32.mrb[3].mxu1 }
 0x327   : > { %1689 = vtanh.f32 %v905_v55  ;;  %v906_v58 = vadd.f32 %v1410_v48, %v895_v56  ;;  %v1411_v61 = vmul.f32 -1.442695, %v905_v55 }
 0x329   : > { %1691 = vtanh.f32 %v906_v58  ;;  %v1412_v62 = vmul.f32 -1.442695, %v906_v58 }
 0x32a   : > { %1693 = vpow2.f32 %v1411_v61 }
 0x32b   : > { %1695 = vpow2.f32 %v1412_v62 }
 0x331   : > { %v1690_v59 = vpop.eup %1689 }
 0x332   : > { %933 = vrot.lane.b32.xlu0 %v1690_v59, %s2013_s7 }
 0x333   : > { %v1692_v60 = vpop.eup %1691 }
 0x334   : > { %v1694_v63 = vpop.eup %1693 }
 0x335   : > { %v913_v0 = vadd.f32 1.0, %v1694_v63  ;;  %v1696_v1 = vpop.eup %1695 }
 0x336   : > { %935 = vrot.lane.b32.xlu0 %v1692_v60, %s2013_s7  ;;  %v914_v2 = vadd.f32 1.0, %v1696_v1 }
 0x337   : > { %1697 = vrcp.f32 %v913_v0 }
 0x338   : > { %1699 = vrcp.f32 %v914_v2 }
 0x341   : > { %v1698_v3 = vpop.eup %1697 }
 0x342   : > { %v1700_v6 = vpop.eup %1699  ;;  %v929_v10 = vmul.f32 %v1698_v3, %v924_v9 }
 0x343   : > { %v930_v14 = vmul.f32 %v1700_v6, %v926_v11 }
 0x3a4   : > { %v934_v4 = vpop.permute.xlu0 %933 }
 0x3a5   : > { %v939_v5 = vmul.f32 %v1698_v3, %v934_v4 }
 0x3a7   : > { %943 = vrot.lane.b32.xlu0 %v939_v5, %s2012_s17 }
 0x3a8   : > { %v936_v7 = vpop.permute.xlu0 %935 }
 0x3a9   : > { %v940_v8 = vmul.f32 %v1700_v6, %v936_v7 }
 0x3ab   : > { %945 = vrot.lane.b32.xlu1 %v940_v8, %s2012_s17 }
 0x419   : > { %v944_v12 = vpop.permute.xlu0 %943 }
 0x41a   : > { %v949_v13 = vadd.f32 %v944_v12, %v929_v10 }
 0x41c   : > { %1701 = vtanh.f32 %v949_v13 }
 0x41d   : > { %v946_v15 = vpop.permute.xlu1 %945 }
 0x41e   : > { %v950_v16 = vadd.f32 %v946_v15, %v930_v14 }
 0x420   : > { %1703 = vtanh.f32 %v950_v16 }
 0x426   : > { %v1702_v17 = vpop.eup %1701 }
 0x427   : > { %955 = vrot.lane.b32.xlu0 %v1702_v17, %s2013_s7 }
 0x42a   : > { %v1704_v18 = vpop.eup %1703 }
 0x42b   : > { %957 = vrot.lane.b32.xlu1 %v1704_v18, %s2013_s7 }
 0x499   : > { %v956_v19 = vpop.permute.xlu0 %955 }
 0x49a   : > { %v961_v20 = vmul.f32 %v1698_v3, %v956_v19 }
 0x49c   : > { %965 = vrot.lane.b32.xlu0 %v961_v20, %s2012_s17 }
 0x49d   : > { %v958_v21 = vpop.permute.xlu1 %957 }
 0x49e   : > { %v962_v22 = vmul.f32 %v1700_v6, %v958_v21 }
 0x4a0   : > { %976 = vrot.lane.b32.xlu0 %v949_v13, %s2014_s15  ;;  %967 = vrot.lane.b32.xlu1 %v962_v22, %s2012_s17 }
 0x4a4   : > { %978 = vrot.lane.b32.xlu1 %v950_v16, %s2014_s15 }
 0x50e   : > { %v966_v23 = vpop.permute.xlu0 %965 }
 0x50f   : > { %v972_v24 = vsel %vm971_vm5, %v966_v23, 0.0 }
 0x510   : > { %984 = vst [vmem:[%s2376_s16] sm:$0xff] %v972_v24  ;;  %988 = vst [vmem:[#allocation2] sm:$0xff] %v972_v24 }
 0x512   : > { %v977_v25 = vpop.permute.xlu0 %976  ;;  %v968_v26 = vpop.permute.xlu1 %967  ;;  %993 = sbr.rel (%p1413_p12) target bundleno = 1518 (0x5ee), region = 84 }
 0x513   : > { %v982_v27 = vsel %vm971_vm5, %v977_v25, 0.0  ;;  %v973_v28 = vsel %vm971_vm5, %v968_v26, 0.0  ;;  %v1424_v40 = vpack.c.bf16 (!%p1413_p12), %v968_v26, %v966_v23 }
 0x514   : > { %986 = vst [vmem:[%s2379_s2] sm:$0xff] %v982_v27  ;;  %985 = vst [vmem:[%s2376_s16 + $0x8] sm:$0xff] %v973_v28 }
 0x515   : > { %989 = vst [vmem:[#allocation2 + $0x8] sm:$0xff] %v973_v28  ;;  %1555 = vmatmul.mubr.msk.bf16.vlgmr.msra.gmra.mrb[0].mxu0 (!%p1413_p12), %vm1423_vm7, %v1424_v40 }
 0x516   : > { %v979_v29 = vpop.permute.xlu1 %978 }
 0x517   : > { %v983_v30 = vsel %vm971_vm5, %v979_v29, 0.0 }
 0x518   : > { %987 = vst [vmem:[%s2379_s2 + $0x8] sm:$0xff] %v983_v30 }
 0x5e8   : > { %v1100_v42 = vpop.f32.mrb[0].mxu0 }
 0x5e9   : > { %v1101_v43 = vadd.f32 %v1414_v41, %v1100_v42  ;;  %v1556_v44 = vpop.f32.mrb[1].mxu0 }
 0x5ea   : > { %v1103_v45 = vpop.f32.mrb[2].mxu0 }
 0x5eb   : > { %1107 = vst [vmem:[#allocation12] sm:$0xff] %v1101_v43  ;;  %v1104_v46 = vadd.f32 %v1414_v41, %v1103_v45  ;;  %v1557_v47 = vpop.f32.mrb[3].mxu0 }
 0x5ed   : > { %1108 = vst [vmem:[#allocation12 + $0x8] sm:$0xff] %v1104_v46 }
 0x5ee PF: > { %s2641_s22 = sld [smem:[#allocation26_spill]]  ;;  %s1440_s5 = sshll.u32 %s2101_s21, 8 }
 0x5ef   : > { %s2642_s27 = sld [smem:[#allocation34_spill]]  ;;  %s1141_s23 = sshll.u32 %s2376_s16, 4  ;;  %s2449_s23 = int_to_ptr.vmem [resolvable:$true] %s1141_s23 }
 0x5f0   : > { %s2643_s4 = sld [smem:[#allocation35_spill]]  ;;  %s1110_s29 = scalar_lea.sflag [#allocation14], %s2338_s19 }
 0x5f1   : > { %s1859_s17 = scalar_lea.vmem %s2449_s23, 256  ;;  %s2017_s6 = smov [#allocation13]  }
 0x5f2   : > { %p1860_p11 = scmp.ne.s32.totalorder %s2449_s23, %s1859_s17  ;;  %s1863_s24 = sshll.u32 %s2017_s6, 4  ;;  %s1864_s24 = int_to_ptr.vmem [resolvable:$false] %s1863_s24 }
 0x5f3   : > { %s1865_s16 = scalar_lea.vmem %s1864_s24, 512  ;;  %p1866_p3 = scmp.lt.s32.totalorder %s2449_s23, %s1864_s24 }
 0x5f4   : > { %p2644_p4 = scmp.ne.s32.totalorder %s2641_s22, 0  ;;  %p1867_p5 = scmp.lt.s32.totalorder %s1865_s16, %s1859_s17 }
 0x5f5   : > { %s2446_s10 = scalar_lea.hbm %s2642_s27, %s1440_s5 }
 0x5f6   : > { %s2454_s9 = scalar_lea.hbm %s2643_s4, %s1440_s5  ;;  %p1861_p6 = pnand %p1860_p11, %p2644_p4 }
 0x5f7   : > { %p1868_p8 = por %p1867_p5, %p1866_p3 }
 0x5f8   : > { %p1862_p9 = pneg %p1861_p6 }
 0x5fa   : > { %p1869_p7 = pnand %p1868_p8, %p1862_p9 }
 0x5fc   : > { %1872 = shalt.err (!%p1869_p7)
}
 0x5fd   : > { %s1873_s25 = scalar_lea.hbm %s2446_s10, 256  ;;  %s1877_s30 = scalar_lea.hbm %s2642_s27, 512 }
 0x5fe   : > { %p1874_p0 = scmp.ne.s32.totalorder %s2446_s10, %s1873_s25  ;;  %p1878_p10 = scmp.lt.u32.totalorder %s2446_s10, %s2642_s27 }
 0x5ff   : > { %p1879_p13 = scmp.lt.u32.totalorder %s1877_s30, %s1873_s25  ;;  %p1881_p11 = scmp.lt.u32.totalorder %s1873_s25, %s2446_s10 }
 0x600   : > { %p1875_p1 = pnand %p1874_p0, %p2644_p4 }
 0x601   : > { %p1880_p12 = por %p1879_p13, %p1878_p10 }
 0x602   : > { %p1876_p2 = pneg %p1875_p1 }
 0x603   : > { %p1882_p6 = por %p1881_p11, %p1880_p12 }
 0x605   : > { %p1883_p9 = pnand %p1882_p6, %p1876_p2 }
 0x607   : > { %1886 = shalt.err (!%p1883_p9)
}
 0x608   : > { %s2018_s5 = smov 128   ;;  %s2019_s28 = smov 8  }
 0x609   : > { %1574 = dma.vmem_to_hbm [thread:$0]  (%p2644_p4), %s2449_s23, 256, %s2446_s10, %s1110_s29, %s2018_s5, %s2018_s5, %s2019_s28  }
 0x60a   : > { %s1157_s13 = sshll.u32 %s2379_s2, 4  ;;  %s2020_s11 = smov [#allocation12]   ;;  %s2484_s13 = int_to_ptr.vmem [resolvable:$true] %s1157_s13 }
 0x60b   : > { %s1125_s0 = sshll.u32 %s2020_s11, 4  ;;  %p2645_p5 = scmp.eq.s32.totalorder %s2101_s21, 1  ;;  %s1126_s0 = int_to_ptr.vmem [resolvable:$true] %s1125_s0 }
 0x60c   : > { %s1887_s17 = scalar_lea.vmem %s1126_s0, 256  ;;  %p1894_p0 = scmp.lt.s32.totalorder %s1126_s0, %s1126_s0 }
 0x60d   : > { %p1888_p3 = scmp.ne.s32.totalorder %s1126_s0, %s1887_s17  ;;  %p1895_p1 = scmp.lt.s32.totalorder %s1887_s17, %s1887_s17 }
 0x60f   : > { %p1889_p8 = pnand %p1888_p3, %p2645_p5  ;;  %p1896_p2 = por %p1895_p1, %p1894_p0 }
 0x611   : > { %p1890_p7 = pneg %p1889_p8 }
 0x613   : > { %p1897_p10 = pnand %p1896_p2, %p1890_p7 }
 0x615   : > { %1900 = shalt.err (!%p1897_p10)
}
 0x616   : > { %s2646_s16 = sld [smem:[#allocation33_spill]]  ;;  %p2647_p12 = pmov %p2645_p5 }
 0x61c   : > { %s1901_s2 = scalar_lea.hbm %s2646_s16, 256 }
 0x61d   : > { %p1902_p13 = scmp.ne.s32.totalorder %s2646_s16, %s1901_s2  ;;  %p1907_p9 = scmp.lt.u32.totalorder %s1901_s2, %s2646_s16 }
 0x61f   : > { %p1903_p11 = pnand %p1902_p13, %p2647_p12 }
 0x621   : > { %p1904_p6 = pneg %p1903_p11 }
 0x623   : > { %p1909_p3 = pnand %p1907_p9, %p1904_p6 }
 0x625   : > { %1912 = shalt.err (!%p1909_p3)
}
 0x626   : > { %1573 = dma.vmem_to_hbm [thread:$0]  (%p2645_p5), %s1126_s0, 256, %s2646_s16, [#allocation5], %s2018_s5, %s2018_s5, %s2019_s28  }
 0x627   : > { %s1913_s26 = scalar_lea.vmem %s2484_s13, 256  ;;  %s2021_s14 = smov [#allocation15]  }
 0x628   : > { %p1914_p8 = scmp.ne.s32.totalorder %s2484_s13, %s1913_s26  ;;  %s1917_s11 = sshll.u32 %s2021_s14, 4  ;;  %s1918_s11 = int_to_ptr.vmem [resolvable:$false] %s1917_s11 }
 0x629   : > { %s1919_s17 = scalar_lea.vmem %s1918_s11, 512  ;;  %p1920_p1 = scmp.lt.s32.totalorder %s2484_s13, %s1918_s11 }
 0x62a   : > { %p1915_p7 = pnand %p1914_p8, %p2644_p4  ;;  %p1921_p2 = scmp.lt.s32.totalorder %s1919_s17, %s1913_s26 }
 0x62c   : > { %p1916_p0 = pneg %p1915_p7  ;;  %p1922_p10 = por %p1921_p2, %p1920_p1 }
 0x62e   : > { %p1923_p13 = pnand %p1922_p10, %p1916_p0 }
 0x630   : > { %1926 = shalt.err (!%p1923_p13)
}
 0x631   : > { %s1927_s0 = scalar_lea.hbm %s2454_s9, 256  ;;  %s1931_s2 = scalar_lea.hbm %s2643_s4, 512 }
 0x632   : > { %p1928_p12 = scmp.ne.s32.totalorder %s2454_s9, %s1927_s0  ;;  %p1932_p9 = scmp.lt.u32.totalorder %s2454_s9, %s2643_s4 }
 0x633   : > { %p1933_p3 = scmp.lt.u32.totalorder %s1931_s2, %s1927_s0  ;;  %p1935_p8 = scmp.lt.u32.totalorder %s1927_s0, %s2454_s9 }
 0x634   : > { %p1929_p11 = pnand %p1928_p12, %p2644_p4 }
 0x635   : > { %p1934_p5 = por %p1933_p3, %p1932_p9 }
 0x636   : > { %p1930_p6 = pneg %p1929_p11 }
 0x637   : > { %p1936_p7 = por %p1935_p8, %p1934_p5 }
 0x639   : > { %p1937_p0 = pnand %p1936_p7, %p1930_p6 }
 0x63b   : > { %1940 = shalt.err (!%p1937_p0)
}
 0x63c   : > { %1575 = dma.vmem_to_hbm [thread:$0]  (%p2644_p4), %s2484_s13, 256, %s2454_s9, %s1110_s29, %s2018_s5, %s2018_s5, %s2019_s28  }
 0x63d   : > { %p2648_p1 = scmp.eq.s32.totalorder %s2101_s21, 1 }
 0x63f   : > { %1974 = dma.done.wait (%p2648_p1), [#allocation5], 256   ;;  %p2649_p2 = pmov %p2648_p1 }
 0x641   : > { %1976 = vsyncadd (%p2649_p2), [#allocation5], 4294967040 }
 0x642 PF: > { %s2650_s25 = sadd.s32 4294967294, %s1995_s20   ;;  %s2651_s7 = sld [smem:[#allocation23_spill]] }
 0x643   : > { %s1176_s22 = sand.u32 1, %s2650_s25   ;;  %p2653_p13 = scmp.ge.s32.totalorder %s1995_s20, 2 }
 0x644   : > { %s1177_s15 = scalar_lea.sflag [#allocation14], %s1176_s22 }
 0x648   : > { %p2652_p10 = scmp.ne.s32.totalorder %s2651_s7, 0 }
 0x64a   : > { %p1598_p12 = pnand %p2653_p13, %p2652_p10 }
 0x64c   : > { %1978 = dma.done.wait (!%p1598_p12), %s1177_s15, 512  }
 0x64d   : > { %1980 = vsyncadd (!%p1598_p12), %s1177_s15, 4294966784  ;;  %s2654_s20 = sld [smem:[#allocation24_spill]]  ;;  %s2655_s19 = sld [smem:[#allocation22_spill]] }
 0x64e   : > { %s2656_s9 = sld [smem:[#allocation25_spill]]  ;;  %s2657_s17 = smov %s1987_s18 }
 0x653   : > { %p30_p4 = scmp.ge.s32.totalorder %s2654_s20, 4   ;;  %s2658_s18 = smov %s2655_s19 }
 0x654   : > { %s2659_s19 = smov %s2656_s9 }
 0x655   :  { %32 = sbr.rel (!%p30_p4) target bundleno = 19 (0x13), region = 172 }
 0x65c   :  { %1191 = vsyncpa [#allocation4], 1 }
 0x65d   :  { %1193 = vsyncpa [#allocation4 + $0x1], 1 }
 0x65e   :  { %1194 = vsyncpa [#allocation7], 1 }
 0x65f   :  { %1196 = vsyncpa [#allocation7 + $0x1], 1 }
 0x660   :  { %1197 = vsyncpa [#allocation10], 1 }
 0x661   :  { %1199 = vsyncpa [#allocation10 + $0x1], 1 }
 0x662   :  { %1200 = vsyncpa [#allocation5], 1 }
 0x663   :  { %1202 = vsyncpa [#allocation5 + $0x1], 1 }
 0x664   :  { %1203 = vsyncpa [#allocation14], 1 }
 0x665   :  { %1205 = vsyncpa [#allocation14 + $0x1], 1 }

</bundles_post_ra>
